<compile_context>
chip_gen: v7x
topology: tpu7x:2x2x1
jax: 0.10.0
libtpu: 0.0.40
codegen_flags: <defaults>
</compile_context>

<pallas_src>
import jax
import jax.numpy as jnp
from jax.experimental import pallas as pl
from jax.experimental.pallas import tpu as pltpu

LOG_STD_MIN = -10.0
LOG_STD_MAX = 2.0

HIDDEN1 = 128
HIDDEN2 = 64
HIDDEN2_PAD = 128
LANE = 128


def _round_up(x, m):
    return (x + m - 1) // m * m


# ---------------------------------------------------------------------------
# Kernel
# ---------------------------------------------------------------------------
def actor_kernel(obs_ref, w1_ref, b1_ref, w2_ref, b2_ref, wh_ref, bh_ref,
                 lo_ref, hi_ref, out_ref):
    # Cast f32 obs -> bf16 in-kernel (free VPU work hidden under DMA/MXU).
    x = obs_ref[...].astype(w1_ref.dtype)                             # (TB, D_obs)

    # FC1 + ReLU (bf16 MXU, f32 accumulation)
    h1 = jnp.dot(x, w1_ref[...], preferred_element_type=jnp.float32)
    h1 = jnp.maximum(h1 + b1_ref[...], 0.0)                           # (TB, 128) f32
    h1 = h1.astype(w2_ref.dtype)

    # FC2 + ReLU (HIDDEN2 zero-padded to 128 lanes; pad cols are relu(0)=0)
    h2 = jnp.dot(h1, w2_ref[...], preferred_element_type=jnp.float32)
    h2 = jnp.maximum(h2 + b2_ref[...], 0.0)                           # (TB, 128) f32
    h2 = h2.astype(wh_ref.dtype)

    # Fused (mu | log_std | zero-pad) head -> lane-dense (TB, head_pad)
    head = jnp.dot(h2, wh_ref[...], preferred_element_type=jnp.float32)
    head = head + bh_ref[...]

    # Column-wise clamp via precomputed lo/hi residents: mu/pad columns use
    # (-inf, +inf) so they pass through; log_std columns get [MIN, MAX].
    head = jnp.minimum(jnp.maximum(head, lo_ref[...]), hi_ref[...])

    out_ref[...] = head.astype(out_ref.dtype)                         # bf16 store


# ---------------------------------------------------------------------------
# Wrapper
# ---------------------------------------------------------------------------
def actor_forward(obs, params, *, tile_b=2048):
    """Actor forward pass.

    obs: (B, dim_observation) f32
    params: output of prepare_actor_params()
    returns: (mu, log_std), each (B, dim_action) f32
    """
    B, D_obs = obs.shape
    A = params["dim_action"]
    head_pad = params["w_head"].shape[1]

    # Right-size the batch tile: enough tiles to cover B at <= tile_b rows each,
    # and at least 2 tiles when B >= 16 so v7x can shard across both TCs.
    n_tiles = pl.cdiv(B, tile_b)
    if n_tiles == 1 and B >= 16:
        n_tiles = 2
    tb = _round_up(pl.cdiv(B, n_tiles), 8)
    B_pad = n_tiles * tb                      # padding < 8 rows per tile
    if B_pad != B:
        obs = jnp.pad(obs, ((0, B_pad - B), (0, 0)))

    def resident(arr):
        # Full-array block with a constant index_map: DMA'd once, reused.
        return pl.BlockSpec(arr.shape, lambda i: (0, 0))

    out = pl.pallas_call(
        actor_kernel,
        out_shape=jax.ShapeDtypeStruct((B_pad, head_pad), jnp.bfloat16),
        grid=(n_tiles,),
        in_specs=[
            pl.BlockSpec((tb, D_obs), lambda i: (i, 0)),   # streamed f32 obs tile
            resident(params["w1"]),
            resident(params["b1"]),
            resident(params["w2"]),
            resident(params["b2"]),
            resident(params["w_head"]),
            resident(params["b_head"]),
            resident(params["clamp_lo"]),
            resident(params["clamp_hi"]),
        ],
        out_specs=pl.BlockSpec((tb, head_pad), lambda i: (i, 0)),
        compiler_params=pltpu.CompilerParams(
            dimension_semantics=("parallel",)),
    )(obs, params["w1"], params["b1"], params["w2"], params["b2"],
      params["w_head"], params["b_head"], params["clamp_lo"], params["clamp_hi"])

    mu = out[:B, :A].astype(jnp.float32)
    log_std = out[:B, A:2 * A].astype(jnp.float32)
    return mu, log_std


# ---------------------------------------------------------------------------
# Parameter construction / preparation
# ---------------------------------------------------------------------------
def init_actor_params(key, dim_observation, dim_action):
    """Raw nn.Linear-style parameters: W is (out, in), b is (out,)."""
    ks = jax.random.split(key, 8)

    def linear(kw, kb, fan_in, fan_out):
        bound = 1.0 / jnp.sqrt(jnp.float32(fan_in))
        w = jax.random.uniform(kw, (fan_out, fan_in), jnp.float32, -bound, bound)
        b = jax.random.uniform(kb, (fan_out,), jnp.float32, -bound, bound)
        return w, b

    w1, b1 = linear(ks[0], ks[1], dim_observation, HIDDEN1)
    w2, b2 = linear(ks[2], ks[3], HIDDEN1, HIDDEN2)
    wmu, bmu = linear(ks[4], ks[5], HIDDEN2, dim_action)
    wstd, bstd = linear(ks[6], ks[7], HIDDEN2, dim_action)
    return {"w1": w1, "b1": b1, "w2": w2, "b2": b2,
            "wmu": wmu, "bmu": bmu, "wstd": wstd, "bstd": bstd}


def prepare_actor_params(raw, dim_action, compute_dtype=jnp.bfloat16):
    """Transpose weights to (in, out), pad HIDDEN2 -> 128, fuse + lane-pad the
    heads, cast weights to bf16, and precompute the column-wise clamp vectors."""
    head_pad = max(LANE, _round_up(2 * dim_action, LANE))

    # FC2: (128, 64) -> zero-pad output dim to 128 lanes.
    w2 = jnp.zeros((HIDDEN1, HIDDEN2_PAD), jnp.float32)
    w2 = w2.at[:, :HIDDEN2].set(raw["w2"].T)
    b2 = jnp.zeros((1, HIDDEN2_PAD), jnp.float32)
    b2 = b2.at[0, :HIDDEN2].set(raw["b2"])

    # Fused head: (128, head_pad); rows >= HIDDEN2 are zero (h2 pad is zero too).
    w_head = jnp.zeros((HIDDEN2_PAD, head_pad), jnp.float32)
    w_head = w_head.at[:HIDDEN2, :dim_action].set(raw["wmu"].T)
    w_head = w_head.at[:HIDDEN2, dim_action:2 * dim_action].set(raw["wstd"].T)

    b_head = jnp.zeros((1, head_pad), jnp.float32)
    b_head = b_head.at[0, :dim_action].set(raw["bmu"])
    b_head = b_head.at[0, dim_action:2 * dim_action].set(raw["bstd"])

    # Clamp vectors: only the log_std columns get finite bounds.
    clamp_lo = jnp.full((1, head_pad), -jnp.inf, jnp.float32)
    clamp_lo = clamp_lo.at[0, dim_action:2 * dim_action].set(LOG_STD_MIN)
    clamp_hi = jnp.full((1, head_pad), jnp.inf, jnp.float32)
    clamp_hi = clamp_hi.at[0, dim_action:2 * dim_action].set(LOG_STD_MAX)

    return {
        "w1": raw["w1"].T.astype(compute_dtype),            # (D_obs, 128)
        "b1": raw["b1"].reshape(1, -1).astype(jnp.float32),  # (1, 128)
        "w2": w2.astype(compute_dtype),                       # (128, 128)
        "b2": b2,                                             # (1, 128) f32
        "w_head": w_head.astype(compute_dtype),               # (128, head_pad)
        "b_head": b_head,                                     # (1, head_pad) f32
        "clamp_lo": clamp_lo,                                 # (1, head_pad) f32
        "clamp_hi": clamp_hi,                                 # (1, head_pad) f32
        "dim_action": dim_action,
    }


# ---------------------------------------------------------------------------
# Plain-JAX reference (f32, nn.Linear convention)
# ---------------------------------------------------------------------------
def actor_forward_ref(obs, raw):
    h1 = jnp.maximum(obs @ raw["w1"].T + raw["b1"], 0.0)
    h2 = jnp.maximum(h1 @ raw["w2"].T + raw["b2"], 0.0)
    mu = h2 @ raw["wmu"].T + raw["bmu"]
    log_std = jnp.clip(h2 @ raw["wstd"].T + raw["bstd"], LOG_STD_MIN, LOG_STD_MAX)
    return mu, log_std


# TODO(synk): evaluate()/get_action() (Normal rsample) are host-side distribution
# sampling and are intentionally left outside the kernel.

if __name__ == "__main__":
    key = jax.random.PRNGKey(0)
    k_params, k_obs = jax.random.split(key)

    dim_observation = 16
    dim_action = 2

    raw = init_actor_params(k_params, dim_observation, dim_action)
    params = prepare_actor_params(raw, dim_action)

    # 8-aligned, ragged, and multi-tile (B >= 16 -> grid of 2) batches.
    for batch in (8, 5, 40):
        obs = jax.random.normal(jax.random.fold_in(k_obs, batch),
                                (batch, dim_observation), jnp.float32)

        mu, log_std = actor_forward(obs, params)
        jax.block_until_ready((mu, log_std))

        mu_ref, log_std_ref = actor_forward_ref(obs, raw)
        assert mu.shape == (batch, dim_action)
        assert log_std.shape == (batch, dim_action)
        # bf16 weights/output with f32 accumulation -> loose tolerance.
        assert jnp.allclose(mu, mu_ref, atol=5e-2, rtol=5e-2), (
            jnp.max(jnp.abs(mu - mu_ref)))
        assert jnp.allclose(log_std, log_std_ref, atol=5e-2, rtol=5e-2), (
            jnp.max(jnp.abs(log_std - log_std_ref)))

    print("KERNEL_OK")
</pallas_src>

<mosaic_0001>
module attributes {stable_mosaic.version = 11 : i64} {
  func.func @actor_kernel(%arg0: i32, %arg1: memref<8x16xf32, #tpu.memory_space<vmem>>, %arg2: memref<16x128xbf16, #tpu.memory_space<vmem>>, %arg3: memref<1x128xf32, #tpu.memory_space<vmem>>, %arg4: memref<128x128xbf16, #tpu.memory_space<vmem>>, %arg5: memref<1x128xf32, #tpu.memory_space<vmem>>, %arg6: memref<128x128xbf16, #tpu.memory_space<vmem>>, %arg7: memref<1x128xf32, #tpu.memory_space<vmem>>, %arg8: memref<1x128xf32, #tpu.memory_space<vmem>>, %arg9: memref<1x128xf32, #tpu.memory_space<vmem>>, %arg10: memref<8x128xbf16, #tpu.memory_space<vmem>>) attributes {dimension_semantics = [#tpu.dimension_semantics<parallel>], iteration_bounds = array<i64: 1>, scalar_prefetch = 0 : i64, scratch_operands = 0 : i64, tpu.core_type = #tpu.core_type<tc>, window_params = [{transform_indices = @transform_0, window_bounds = array<i64: 8, 16>}, {pipeline_mode = #tpu.pipeline_mode<synchronous>, transform_indices = @transform_1, window_bounds = array<i64: 16, 128>}, {pipeline_mode = #tpu.pipeline_mode<synchronous>, transform_indices = @transform_2, window_bounds = array<i64: 1, 128>}, {pipeline_mode = #tpu.pipeline_mode<synchronous>, transform_indices = @transform_3, window_bounds = array<i64: 128, 128>}, {pipeline_mode = #tpu.pipeline_mode<synchronous>, transform_indices = @transform_4, window_bounds = array<i64: 1, 128>}, {pipeline_mode = #tpu.pipeline_mode<synchronous>, transform_indices = @transform_5, window_bounds = array<i64: 128, 128>}, {pipeline_mode = #tpu.pipeline_mode<synchronous>, transform_indices = @transform_6, window_bounds = array<i64: 1, 128>}, {pipeline_mode = #tpu.pipeline_mode<synchronous>, transform_indices = @transform_7, window_bounds = array<i64: 1, 128>}, {pipeline_mode = #tpu.pipeline_mode<synchronous>, transform_indices = @transform_8, window_bounds = array<i64: 1, 128>}, {transform_indices = @transform_9, window_bounds = array<i64: 8, 128>}]} {
    %c0 = arith.constant 0 : index
    %c0_0 = arith.constant 0 : index
    %0 = vector.load %arg1[%c0, %c0_0] : memref<8x16xf32, #tpu.memory_space<vmem>>, vector<8x16xf32>
    %1 = arith.truncf %0 : vector<8x16xf32> to vector<8x16xbf16>
    %c0_1 = arith.constant 0 : index
    %c0_2 = arith.constant 0 : index
    %2 = vector.load %arg2[%c0_1, %c0_2] : memref<16x128xbf16, #tpu.memory_space<vmem>>, vector<16x128xbf16>
    %cst = arith.constant dense<0.000000e+00> : vector<8x128xf32>
    %3 = tpu.matmul %1, %2, %cst {dimension_numbers = #tpu.dot_dimension_numbers<[1], [0], [0], [1], [0, 0, 1, 1], [], []>} : vector<8x16xbf16>, vector<16x128xbf16>, vector<8x128xf32> -> vector<8x128xf32>
    %c0_3 = arith.constant 0 : index
    %c0_4 = arith.constant 0 : index
    %4 = vector.load %arg3[%c0_3, %c0_4] : memref<1x128xf32, #tpu.memory_space<vmem>>, vector<1x128xf32>
    %5 = vector.broadcast %4 : vector<1x128xf32> to vector<8x128xf32>
    %6 = arith.addf %3, %5 : vector<8x128xf32>
    %cst_5 = arith.constant 0.000000e+00 : f32
    %7 = vector.broadcast %cst_5 : f32 to vector<8x128xf32>
    %8 = arith.maximumf %6, %7 : vector<8x128xf32>
    %9 = arith.truncf %8 : vector<8x128xf32> to vector<8x128xbf16>
    %c0_6 = arith.constant 0 : index
    %c0_7 = arith.constant 0 : index
    %10 = vector.load %arg4[%c0_6, %c0_7] : memref<128x128xbf16, #tpu.memory_space<vmem>>, vector<128x128xbf16>
    %cst_8 = arith.constant dense<0.000000e+00> : vector<8x128xf32>
    %11 = tpu.matmul %9, %10, %cst_8 {dimension_numbers = #tpu.dot_dimension_numbers<[1], [0], [0], [1], [0, 0, 1, 1], [], []>} : vector<8x128xbf16>, vector<128x128xbf16>, vector<8x128xf32> -> vector<8x128xf32>
    %c0_9 = arith.constant 0 : index
    %c0_10 = arith.constant 0 : index
    %12 = vector.load %arg5[%c0_9, %c0_10] : memref<1x128xf32, #tpu.memory_space<vmem>>, vector<1x128xf32>
    %13 = vector.broadcast %12 : vector<1x128xf32> to vector<8x128xf32>
    %14 = arith.addf %11, %13 : vector<8x128xf32>
    %cst_11 = arith.constant 0.000000e+00 : f32
    %15 = vector.broadcast %cst_11 : f32 to vector<8x128xf32>
    %16 = arith.maximumf %14, %15 : vector<8x128xf32>
    %17 = arith.truncf %16 : vector<8x128xf32> to vector<8x128xbf16>
    %c0_12 = arith.constant 0 : index
    %c0_13 = arith.constant 0 : index
    %18 = vector.load %arg6[%c0_12, %c0_13] : memref<128x128xbf16, #tpu.memory_space<vmem>>, vector<128x128xbf16>
    %cst_14 = arith.constant dense<0.000000e+00> : vector<8x128xf32>
    %19 = tpu.matmul %17, %18, %cst_14 {dimension_numbers = #tpu.dot_dimension_numbers<[1], [0], [0], [1], [0, 0, 1, 1], [], []>} : vector<8x128xbf16>, vector<128x128xbf16>, vector<8x128xf32> -> vector<8x128xf32>
    %c0_15 = arith.constant 0 : index
    %c0_16 = arith.constant 0 : index
    %20 = vector.load %arg7[%c0_15, %c0_16] : memref<1x128xf32, #tpu.memory_space<vmem>>, vector<1x128xf32>
    %21 = vector.broadcast %20 : vector<1x128xf32> to vector<8x128xf32>
    %22 = arith.addf %19, %21 : vector<8x128xf32>
    %c0_17 = arith.constant 0 : index
    %c0_18 = arith.constant 0 : index
    %23 = vector.load %arg8[%c0_17, %c0_18] : memref<1x128xf32, #tpu.memory_space<vmem>>, vector<1x128xf32>
    %24 = vector.broadcast %23 : vector<1x128xf32> to vector<8x128xf32>
    %25 = arith.maximumf %22, %24 : vector<8x128xf32>
    %c0_19 = arith.constant 0 : index
    %c0_20 = arith.constant 0 : index
    %26 = vector.load %arg9[%c0_19, %c0_20] : memref<1x128xf32, #tpu.memory_space<vmem>>, vector<1x128xf32>
    %27 = vector.broadcast %26 : vector<1x128xf32> to vector<8x128xf32>
    %28 = arith.minimumf %25, %27 : vector<8x128xf32>
    %29 = arith.truncf %28 : vector<8x128xf32> to vector<8x128xbf16>
    %c0_21 = arith.constant 0 : index
    %c0_22 = arith.constant 0 : index
    %30 = vector.load %arg10[%c0_21, %c0_22] : memref<8x128xbf16, #tpu.memory_space<vmem>>, vector<8x128xbf16>
    tpu.vector_store %arg10[%c0_21, %c0_22], %29 {strides = array<i32>} : memref<8x128xbf16, #tpu.memory_space<vmem>>, vector<8x128xbf16>,
    return
  }
  func.func @transform_0(%arg0: i32) -> (i32, i32) {
    %c0_i32 = arith.constant 0 : i32
    %c0_i32_0 = arith.constant 0 : i32
    return %arg0, %c0_i32 : i32, i32
  }
  func.func @transform_1(%arg0: i32) -> (i32, i32) {
    %c0_i32 = arith.constant 0 : i32
    %c0_i32_0 = arith.constant 0 : i32
    %c0_i32_1 = arith.constant 0 : i32
    return %c0_i32, %c0_i32_0 : i32, i32
  }
  func.func @transform_2(%arg0: i32) -> (i32, i32) {
    %c0_i32 = arith.constant 0 : i32
    %c0_i32_0 = arith.constant 0 : i32
    %c0_i32_1 = arith.constant 0 : i32
    return %c0_i32, %c0_i32_0 : i32, i32
  }
  func.func @transform_3(%arg0: i32) -> (i32, i32) {
    %c0_i32 = arith.constant 0 : i32
    %c0_i32_0 = arith.constant 0 : i32
    %c0_i32_1 = arith.constant 0 : i32
    return %c0_i32, %c0_i32_0 : i32, i32
  }
  func.func @transform_4(%arg0: i32) -> (i32, i32) {
    %c0_i32 = arith.constant 0 : i32
    %c0_i32_0 = arith.constant 0 : i32
    %c0_i32_1 = arith.constant 0 : i32
    return %c0_i32, %c0_i32_0 : i32, i32
  }
  func.func @transform_5(%arg0: i32) -> (i32, i32) {
    %c0_i32 = arith.constant 0 : i32
    %c0_i32_0 = arith.constant 0 : i32
    %c0_i32_1 = arith.constant 0 : i32
    return %c0_i32, %c0_i32_0 : i32, i32
  }
  func.func @transform_6(%arg0: i32) -> (i32, i32) {
    %c0_i32 = arith.constant 0 : i32
    %c0_i32_0 = arith.constant 0 : i32
    %c0_i32_1 = arith.constant 0 : i32
    return %c0_i32, %c0_i32_0 : i32, i32
  }
  func.func @transform_7(%arg0: i32) -> (i32, i32) {
    %c0_i32 = arith.constant 0 : i32
    %c0_i32_0 = arith.constant 0 : i32
    %c0_i32_1 = arith.constant 0 : i32
    return %c0_i32, %c0_i32_0 : i32, i32
  }
  func.func @transform_8(%arg0: i32) -> (i32, i32) {
    %c0_i32 = arith.constant 0 : i32
    %c0_i32_0 = arith.constant 0 : i32
    %c0_i32_1 = arith.constant 0 : i32
    return %c0_i32, %c0_i32_0 : i32, i32
  }
  func.func @transform_9(%arg0: i32) -> (i32, i32) {
    %c0_i32 = arith.constant 0 : i32
    %c0_i32_0 = arith.constant 0 : i32
    return %arg0, %c0_i32 : i32, i32
  }
}

</mosaic_0001>

<bundles_post_ra>
// kernel: tpu_custom_call.1
= control target key start
LH: loop header
LB: loop body
LE: loop exit
PB: predicated region body
PF: predicated region fallthrough
CT: control target
= control target key end

     0   :  { %14 = vsyncpa [#allocation3], 0  ;;  %s805_s0 = inlined_call_operand.hbm [shape: f32[8,16], index: 0, kind: input, shape index: {}]   ;;  %s806_s1 = inlined_call_operand.hbm [shape: bf16[16,128], index: 1, kind: input, shape index: {}]   ;;  %s807_s2 = inlined_call_operand.vmem [shape: f32[1,128], index: 2, kind: input, shape index: {}]   ;;  %s808_s3 = inlined_call_operand.hbm [shape: bf16[128,128], index: 3, kind: input, shape index: {}]   ;;  %s809_s4 = inlined_call_operand.vmem [shape: f32[1,128], index: 4, kind: input, shape index: {}]   ;;  %s810_s5 = inlined_call_operand.hbm [shape: bf16[128,128], index: 5, kind: input, shape index: {}]   ;;  %s811_s6 = inlined_call_operand.vmem [shape: f32[1,128], index: 6, kind: input, shape index: {}]   ;;  %s812_s7 = inlined_call_operand.vmem [shape: f32[1,128], index: 7, kind: input, shape index: {}]   ;;  %s813_s8 = inlined_call_operand.vmem [shape: f32[1,128], index: 8, kind: input, shape index: {}]   ;;  %s814_s9 = inlined_call_operand.hbm [shape: bf16[8,128], index: 9, kind: output, shape index: {}]  }
   0x1   :  { %15 = vsyncpa [#allocation6], 0 }
   0x2   :  { %16 = vsyncpa [#allocation9], 0 }
   0x3   :  { %17 = vsyncpa [#allocation4], 0  ;;  %s642_s30 = smov [#allocation5]   ;;  %s524_s13 = scalar_lea.hbm %s806_s1, 128 }
   0x4   :  { %s33_s10 = sshll.u32 %s642_s30, 4  ;;  %p525_p0 = scmp.ne.s32.totalorder %s806_s1, %s524_s13  ;;  %s34_s10 = int_to_ptr.vmem [resolvable:$true] %s33_s10 }
   0x5   :  { %p528_p1 = scmp.lt.u32.totalorder %s524_s13, %s806_s1 }
   0x7   :  { %p530_p2 = pnand %p528_p1, %p525_p0 }
   0x9   :  { %533 = shalt.err (!%p530_p2)
}
   0xa   :  { %s534_s18 = scalar_lea.vmem %s34_s10, 128  ;;  %p539_p4 = scmp.lt.s32.totalorder %s34_s10, %s34_s10 }
   0xb   :  { %p535_p3 = scmp.ne.s32.totalorder %s34_s10, %s534_s18  ;;  %p540_p5 = scmp.lt.s32.totalorder %s534_s18, %s534_s18 }
   0xd   :  { %p541_p6 = por %p540_p5, %p539_p4 }
   0xf   :  { %p542_p7 = pnand %p541_p6, %p535_p3 }
  0x11   :  { %545 = shalt.err (!%p542_p7)
}
  0x12   :  { %s643_s19 = smov 64   ;;  %s644_s20 = smov 4  }
  0x13   :  { %39 = dma.hbm_to_vmem [thread:$0]  %s806_s1, 128, %s34_s10, [#allocation6], %s643_s19, %s643_s19, %s644_s20  }
  0x14   :  { %s645_s23 = smov [#allocation2]   ;;  %s646_s25 = smov [#allocation7]  }
  0x15   :  { %s24_s24 = sshll.u32 %s645_s23, 4  ;;  %s47_s26 = sshll.u32 %s646_s25, 4  ;;  %s25_s24 = int_to_ptr.vmem [resolvable:$true] %s24_s24  ;;  %s48_s26 = int_to_ptr.vmem [resolvable:$true] %s47_s26 }
  0x16   :  { %s546_s29 = scalar_lea.hbm %s805_s0, 128 }
  0x17   :  { %p547_p8 = scmp.ne.s32.totalorder %s805_s0, %s546_s29  ;;  %p550_p9 = scmp.lt.u32.totalorder %s546_s29, %s805_s0 }
  0x19   :  { %p552_p10 = pnand %p550_p9, %p547_p8 }
  0x1b   :  { %555 = shalt.err (!%p552_p10)
}
  0x1c   :  { %s556_s1 = scalar_lea.vmem %s25_s24, 128  ;;  %p561_p12 = scmp.lt.s32.totalorder %s25_s24, %s25_s24 }
  0x1d   :  { %p557_p11 = scmp.ne.s32.totalorder %s25_s24, %s556_s1  ;;  %p562_p13 = scmp.lt.s32.totalorder %s556_s1, %s556_s1 }
  0x1f   :  { %p563_p0 = por %p562_p13, %p561_p12 }
  0x21   :  { %p564_p1 = pnand %p563_p0, %p557_p11 }
  0x23   :  { %567 = shalt.err (!%p564_p1)
}
  0x24   :  { %27 = dma.hbm_to_vmem [thread:$0]  %s805_s0, 128, %s25_s24, [#allocation3]  }
  0x25   :  { %s568_s17 = scalar_lea.hbm %s808_s3, 1024 }
  0x26   :  { %p569_p2 = scmp.ne.s32.totalorder %s808_s3, %s568_s17  ;;  %p572_p3 = scmp.lt.u32.totalorder %s568_s17, %s808_s3 }
  0x28   :  { %p574_p4 = pnand %p572_p3, %p569_p2 }
  0x2a   :  { %577 = shalt.err (!%p574_p4)
}
  0x2b   :  { %s578_s25 = scalar_lea.vmem %s48_s26, 1024  ;;  %p583_p6 = scmp.lt.s32.totalorder %s48_s26, %s48_s26 }
  0x2c   :  { %p579_p5 = scmp.ne.s32.totalorder %s48_s26, %s578_s25  ;;  %p584_p7 = scmp.lt.s32.totalorder %s578_s25, %s578_s25 }
  0x2e   :  { %p585_p8 = por %p584_p7, %p583_p6 }
  0x30   :  { %p586_p9 = pnand %p585_p8, %p579_p5 }
  0x32   :  { %589 = shalt.err (!%p586_p9)
}
  0x33   :  { %53 = dma.hbm_to_vmem [thread:$0]  %s808_s3, 1024, %s48_s26, [#allocation6], %s643_s19, %s643_s19, %s644_s20  }
  0x34   :  { %s647_s27 = smov [#allocation8]   ;;  %s590_s11 = scalar_lea.hbm %s810_s5, 1024 }
  0x35   :  { %s61_s28 = sshll.u32 %s647_s27, 4  ;;  %p591_p10 = scmp.ne.s32.totalorder %s810_s5, %s590_s11  ;;  %s62_s28 = int_to_ptr.vmem [resolvable:$true] %s61_s28 }
  0x36   :  { %p594_p11 = scmp.lt.u32.totalorder %s590_s11, %s810_s5 }
  0x38   :  { %p596_p12 = pnand %p594_p11, %p591_p10 }
  0x3a   :  { %599 = shalt.err (!%p596_p12)
}
  0x3b   :  { %s600_s14 = scalar_lea.vmem %s62_s28, 1024  ;;  %p605_p0 = scmp.lt.s32.totalorder %s62_s28, %s62_s28 }
  0x3c   :  { %p601_p13 = scmp.ne.s32.totalorder %s62_s28, %s600_s14  ;;  %p606_p1 = scmp.lt.s32.totalorder %s600_s14, %s600_s14 }
  0x3e   :  { %p607_p2 = por %p606_p1, %p605_p0 }
  0x40   :  { %p608_p3 = pnand %p607_p2, %p601_p13 }
  0x42   :  { %611 = shalt.err (!%p608_p3)
}
  0x43   :  { %67 = dma.hbm_to_vmem [thread:$0]  %s810_s5, 1024, %s62_s28, [#allocation9], %s643_s19, %s643_s19, %s644_s20  }
  0x44   :  { %634 = dma.done.wait [#allocation3], 128  }
  0x45   :  { %635 = vsyncadd [#allocation3], 4294967168 }
  0x46   :  { %636 = dma.done.wait [#allocation6], 1152  }
  0x47   :  { %637 = vsyncadd [#allocation6], 4294966144 }
  0x48   :  { %638 = dma.done.wait [#allocation9], 1024  }
  0x49   :  { %639 = vsyncadd [#allocation9], 4294966272  ;;  %v648_v0 = vmov 0.0   ;;  %vm649_vm0 = vmmov 0   ;;  %v507_v1 = vld [vmem:[#allocation5] sm:$0xff]   ;;  %v87_v2 = vld [vmem:[#allocation2] sm:$0xff] }
  0x4a   :  { %452 = vmatprep.subr.bf16.mxu0 %v648_v0  ;;  %454 = vmatprep.mubr.msk.bf16.mxu0 %vm649_vm0, %v648_v0  ;;  %v88_v3 = vpack.c.bf16 %v87_v2, %v87_v2  ;;  %vm104_vm1 = vcmask 130048   ;;  %v508_v4 = vld [vmem:[#allocation7] sm:$0xff]   ;;  %v509_v5 = vld [vmem:[#allocation7 + $0x8] sm:$0xff]   ;;  %v510_v6 = vld [vmem:[#allocation7 + $0x10] sm:$0xff]   ;;  %s650_s22 = smov [#allocation10]  }
  0x4b   :  { %458 = vmatprep.subr.bf16.mxu1 %v648_v0  ;;  %474 = vmatprep.mubr.msk.bf16.mxu1 %vm649_vm0, %v648_v0  ;;  %v511_v7 = vld [vmem:[#allocation7 + $0x18] sm:$0xff]   ;;  %v512_v8 = vld [vmem:[#allocation7 + $0x20] sm:$0xff]   ;;  %v513_v9 = vld [vmem:[#allocation7 + $0x28] sm:$0xff]   ;;  %s398_s23 = sshll.u32 %s650_s22, 4  ;;  %s399_s23 = int_to_ptr.vmem [resolvable:$true] %s398_s23 }
  0x4c   :  { %453 = vmatpush3.bf16.msra.mxu0 %v507_v1  ;;  %459 = vmatpush3.bf16.msra.mxu1 %v508_v4  ;;  %v514_v10 = vld [vmem:[#allocation7 + $0x30] sm:$0xff]   ;;  %v515_v11 = vld [vmem:[#allocation7 + $0x38] sm:$0xff]   ;;  %v516_v12 = vld [vmem:[#allocation8] sm:$0xff]   ;;  %p617_p5 = scmp.lt.s32.totalorder %s399_s23, %s399_s23 }
  0x4d   :  { %478 = vmatprep.subr.bf16.mxu0 %v648_v0  ;;  %460 = vmatprep.subr.bf16.mxu1 %v648_v0  ;;  %v517_v13 = vld [vmem:[#allocation8 + $0x8] sm:$0xff]   ;;  %v518_v14 = vld [vmem:[#allocation8 + $0x10] sm:$0xff]   ;;  %v519_v15 = vld [vmem:[#allocation8 + $0x18] sm:$0xff]  }
  0x4e   :  { %v520_v16 = vld [vmem:[#allocation8 + $0x20] sm:$0xff]   ;;  %v521_v17 = vld [vmem:[#allocation8 + $0x28] sm:$0xff]   ;;  %v409_v18 = vld [vmem:[%s807_s2] ss:$0 sm:$0xff] }
  0x4f   :  { %455 = vmatmul.mubr.msk.bf16.vlgmr.msra.gmra.mrb[0].mxu0 %vm104_vm1, %v88_v3  ;;  %v522_v26 = vld [vmem:[#allocation8 + $0x30] sm:$0xff]   ;;  %v523_v27 = vld [vmem:[#allocation8 + $0x38] sm:$0xff]  }
  0x50   :  { %494 = vmatprep.mubr.msk.bf16.mxu0 %vm649_vm0, %v648_v0  ;;  %461 = vmatpush3.bf16.msra.mxu1 %v509_v5  ;;  %v412_v28 = vld [vmem:[%s809_s4] ss:$0 sm:$0xff] }
  0x51   :  { %462 = vmatprep.subr.bf16.mxu1 %v648_v0  ;;  %479 = vmatpush3.bf16.msra.mxu0 %v516_v12  ;;  %v421_v36 = vld [vmem:[%s811_s6] ss:$0 sm:$0xff]  ;;  %s612_s6 = scalar_lea.vmem %s399_s23, 64 }
  0x52   :  { %480 = vmatprep.subr.bf16.mxu0 %v648_v0  ;;  %v430_v38 = vld [vmem:[%s812_s7] ss:$0 sm:$0xff]  ;;  %p613_p4 = scmp.ne.s32.totalorder %s399_s23, %s612_s6  ;;  %p618_p6 = scmp.lt.s32.totalorder %s612_s6, %s612_s6 }
  0x53   :  { %v431_v42 = vld [vmem:[%s813_s8] ss:$0 sm:$0xff] }
  0x54   :  { %463 = vmatpush3.bf16.msra.mxu1 %v510_v6  ;;  %p619_p7 = por %p618_p6, %p617_p5 }
  0x55   :  { %464 = vmatprep.subr.bf16.mxu1 %v648_v0  ;;  %481 = vmatpush3.bf16.msra.mxu0 %v517_v13 }
  0x56   :  { %482 = vmatprep.subr.bf16.mxu0 %v648_v0  ;;  %p620_p8 = pnand %p619_p7, %p613_p4 }
  0x58   :  { %465 = vmatpush3.bf16.msra.mxu1 %v511_v7 }
  0x59   :  { %466 = vmatprep.subr.bf16.mxu1 %v648_v0  ;;  %483 = vmatpush3.bf16.msra.mxu0 %v518_v14 }
  0x5a   :  { %484 = vmatprep.subr.bf16.mxu0 %v648_v0 }
  0x5c   :  { %467 = vmatpush3.bf16.msra.mxu1 %v512_v8 }
  0x5d   :  { %468 = vmatprep.subr.bf16.mxu1 %v648_v0  ;;  %485 = vmatpush3.bf16.msra.mxu0 %v519_v15 }
  0x5e   :  { %486 = vmatprep.subr.bf16.mxu0 %v648_v0 }
  0x60   :  { %469 = vmatpush3.bf16.msra.mxu1 %v513_v9 }
  0x61   :  { %470 = vmatprep.subr.bf16.mxu1 %v648_v0  ;;  %487 = vmatpush3.bf16.msra.mxu0 %v520_v16 }
  0x62   :  { %488 = vmatprep.subr.bf16.mxu0 %v648_v0 }
  0x64   :  { %471 = vmatpush3.bf16.msra.mxu1 %v514_v10 }
  0x65   :  { %472 = vmatprep.subr.bf16.mxu1 %v648_v0  ;;  %489 = vmatpush3.bf16.msra.mxu0 %v521_v17 }
  0x66   :  { %490 = vmatprep.subr.bf16.mxu0 %v648_v0 }
  0x68   :  { %473 = vmatpush3.bf16.msra.mxu1 %v515_v11 }
  0x69   :  { %491 = vmatpush3.bf16.msra.mxu0 %v522_v26 }
  0x6a   :  { %492 = vmatprep.subr.bf16.mxu0 %v648_v0 }
  0x6d   :  { %493 = vmatpush3.bf16.msra.mxu0 %v523_v27 }
 0x122   :  { %v142_v19 = vpop.f32.mrb[0].mxu0 }
 0x123   :  { %v143_v20 = vadd.f32 %v409_v18, %v142_v19  ;;  %v456_v21 = vpop.f32.mrb[1].mxu0 }
 0x124   :  { %v145_v22 = vpop.f32.mrb[2].mxu0 }
 0x125   :  { %v148_v23 = vmax.f32 %v143_v20, 0.0  ;;  %v457_v24 = vpop.f32.mrb[3].mxu0 }
 0x127   :  { %v149_v25 = vpack.c.bf16 %v148_v23, %v148_v23 }
 0x129   :  { %475 = vmatmul.mubr.bf16.vlgmr.msra.gmra.mrb[0].mxu1 %v149_v25 }
 0x1fc   :  { %v255_v29 = vpop.f32.mrb[0].mxu1 }
 0x1fd   :  { %v256_v30 = vadd.f32 %v412_v28, %v255_v29  ;;  %v476_v31 = vpop.f32.mrb[1].mxu1 }
 0x1fe   :  { %v258_v32 = vpop.f32.mrb[2].mxu1 }
 0x1ff   :  { %v261_v33 = vmax.f32 %v256_v30, 0.0  ;;  %v477_v34 = vpop.f32.mrb[3].mxu1 }
 0x201   :  { %v262_v35 = vpack.c.bf16 %v261_v33, %v261_v33 }
 0x203   :  { %495 = vmatmul.mubr.bf16.vlgmr.msra.gmra.mrb[4].mxu0 %v262_v35 }
 0x2d6   :  { %v368_v37 = vpop.f32.mrb[4].mxu0 }
 0x2d7   :  { %v369_v39 = vadd.f32 %v421_v36, %v368_v37  ;;  %v496_v40 = vpop.f32.mrb[5].mxu0 }
 0x2d8   :  { %v371_v41 = vpop.f32.mrb[6].mxu0 }
 0x2d9   :  { %v381_v43 = vmax.f32 %v369_v39, %v430_v38  ;;  %v497_v44 = vpop.f32.mrb[7].mxu0 }
 0x2db   :  { %v389_v45 = vmin.f32 %v381_v43, %v431_v42 }
 0x2dd   :  { %v390_v46 = vpack.c.bf16 %v389_v45, %v389_v45 }
 0x2df   :  { %391 = vst [vmem:[#allocation10] sm:$0xf] %v390_v46 }
 0x2e0   :  { %623 = shalt.err (!%p620_p8)
}
 0x2e1   :  { %s624_s0 = scalar_lea.hbm %s814_s9, 64 }
 0x2e2   :  { %p625_p9 = scmp.ne.s32.totalorder %s814_s9, %s624_s0  ;;  %p628_p10 = scmp.lt.u32.totalorder %s624_s0, %s814_s9 }
 0x2e4   :  { %p630_p11 = pnand %p628_p10, %p625_p9 }
 0x2e6   :  { %633 = shalt.err (!%p630_p11)
}
 0x2e7   :  { %401 = dma.vmem_to_hbm [thread:$0]  %s399_s23, 64, %s814_s9, [#allocation4]  }
 0x2e8   :  { %640 = dma.done.wait [#allocation4], 64  }
 0x2e9   :  { %641 = vsyncadd [#allocation4], 4294967232 }
 0x2ea   :  { %405 = vsyncpa [#allocation3], 1 }
 0x2eb   :  { %406 = vsyncpa [#allocation6], 1 }
 0x2ec   :  { %407 = vsyncpa [#allocation9], 1 }
 0x2ed   :  { %408 = vsyncpa [#allocation4], 1 }

</bundles_post_ra>
